<compile_context>
chip_gen: v5e
topology: v5e:2x2
jax: 0.10.0
libtpu: 0.0.40
codegen_flags: <defaults>
</compile_context>

<pallas_src>
import functools

import jax
import jax.numpy as jnp
import numpy as np
from jax.experimental import pallas as pl
from jax.experimental.pallas import tpu as pltpu


def _basic_block_kernel(x_ref, m1_ref, m2_ref, b1_ref, b2_ref, out_ref, x_stage,
                        *, H, W, C, TH, NB):
    """One (batch, H-band) grid step of the fused BasicBlock.

    x_ref   : (1, H, W*C)      whole lane-collapsed image (resident across bands of this n)
    m1_ref  : (3, W*C, W*C)    conv1 banded weights (BN1 scale folded in), one per kernel row dh
    m2_ref  : (3, W*C, W*C)    conv2 banded weights (BN2 scale folded in)
    b1_ref  : (1, W*C)         folded BN1 bias, tiled over W
    b2_ref  : (1, W*C)         folded BN2 bias, tiled over W
    out_ref : (1, TH, W*C)     this band's output rows
    x_stage : (TH+4, W*C)      VMEM staging: x rows [r0-2, r0+TH+2) with zero rows at image border
    """
    WC = W * C
    b = pl.program_id(1)
    r0 = b * TH                                  # first output row of this band

    # ---- stage x rows [r0-2, r0+TH+2); only the 2 out-of-image halo rows are ever zeroed ----
    x_stage[2:2 + TH, :] = x_ref[0, pl.ds(r0, TH), :]

    @pl.when(b > 0)
    def _():
        x_stage[0:2, :] = x_ref[0, pl.ds(r0 - 2, 2), :]

    @pl.when(b == 0)
    def _():
        x_stage[0:2, :] = jnp.zeros((2, WC), x_stage.dtype)

    @pl.when(b < NB - 1)
    def _():
        x_stage[TH + 2:TH + 4, :] = x_ref[0, pl.ds(r0 + TH, 2), :]

    @pl.when(b == NB - 1)
    def _():
        x_stage[TH + 2:TH + 4, :] = jnp.zeros((2, WC), x_stage.dtype)

    # ---- conv1 -> bn1 -> relu over h1 rows [r0-1, r0+TH+1) (1-row halo for conv2) ----
    # Banded matmuls: dw/ci contraction + W zero-padding are inside m1; only dh is a row shift.
    acc1 = jnp.dot(x_stage[0:TH + 2, :], m1_ref[0], preferred_element_type=jnp.float32)
    acc1 = acc1 + jnp.dot(x_stage[1:TH + 3, :], m1_ref[1], preferred_element_type=jnp.float32)
    acc1 = acc1 + jnp.dot(x_stage[2:TH + 4, :], m1_ref[2], preferred_element_type=jnp.float32)
    h1 = jnp.maximum(acc1 + b1_ref[...], 0.0)
    # h1 rows outside the image are conv2's zero padding, not data -> mask them to exactly 0.
    row = r0 - 1 + jax.lax.broadcasted_iota(jnp.int32, (TH + 2, WC), 0)
    h1 = jnp.where((row >= 0) & (row < H), h1, 0.0)

    # ---- conv2 -> bn2 -> + identity -> relu (identity added in the store layout) ----
    acc2 = jnp.dot(h1[0:TH, :], m2_ref[0], preferred_element_type=jnp.float32)
    acc2 = acc2 + jnp.dot(h1[1:TH + 1, :], m2_ref[1], preferred_element_type=jnp.float32)
    acc2 = acc2 + jnp.dot(h1[2:TH + 2, :], m2_ref[2], preferred_element_type=jnp.float32)
    identity = x_stage[2:TH + 2, :]
    y = jnp.maximum(acc2 + b2_ref[...] + identity, 0.0)
    out_ref[0] = y.astype(out_ref.dtype)


def _fold_bn(gamma, beta, mean, var, eps=1e-5):
    scale = gamma / jnp.sqrt(var + eps)
    bias = beta - mean * scale
    return scale, bias


def _banded_conv_matrix(w_hwio, out_scale, W):
    """HWIO (3,3,Cin,Cout) conv weights -> banded matrices (3, W*Cin, W*Cout).

    mats[dh][(w+dw-1)*Cin + ci, w*Cout + co] = w[dh,dw,ci,co] * out_scale[co]; entries with
    w+dw-1 outside [0, W) are absent, which realizes the 'same' W zero-padding for free.
    """
    KH, KW, Cin, Cout = w_hwio.shape
    w = (w_hwio * out_scale.reshape(1, 1, 1, Cout)).astype(jnp.float32)
    mats = []
    for dh in range(KH):
        m = jnp.zeros((W * Cin, W * Cout), jnp.float32)
        for dw in range(KW):
            m = m + jnp.kron(jnp.eye(W, k=1 - dw, dtype=jnp.float32), w[dh, dw])
        mats.append(m)
    return jnp.stack(mats, axis=0)


def basic_block_pallas(x_nhwc, w1, w2, bn1, bn2, *, band_h=None):
    """x_nhwc: (N,H,W,Cin); w1/w2: (3,3,C,C) HWIO; bn*: (gamma, beta, mean, var)."""
    N, H, W, Cin = x_nhwc.shape
    Cout = w1.shape[-1]
    assert Cin == Cout, "BasicBlock identity path requires inplanes == planes"
    C, WC = Cout, W * Cout

    if band_h is None:
        band_h = 8 if H % 8 == 0 else H          # sublane-aligned band height
    assert H % band_h == 0 and band_h >= 2
    assert band_h % 8 == 0 or band_h == H, "band height must be sublane-aligned or full H"
    TH, NB = band_h, H // band_h

    s1, b1 = _fold_bn(*bn1)
    s2, b2 = _fold_bn(*bn2)
    m1 = _banded_conv_matrix(w1, s1, W)                       # (3, WC, WC)
    m2 = _banded_conv_matrix(w2, s2, W)
    b1_lane = jnp.tile(b1, W).reshape(1, WC).astype(jnp.float32)
    b2_lane = jnp.tile(b2, W).reshape(1, WC).astype(jnp.float32)

    # Lane-collapsed input; no jnp.pad HBM pass (halo handled in-kernel, W pad in banded weights).
    x_lane = x_nhwc.reshape(N, H, WC).astype(jnp.float32)

    kernel = functools.partial(_basic_block_kernel, H=H, W=W, C=C, TH=TH, NB=NB)

    # Derive the VMEM budget from the actual footprint (double-buffered x/out blocks,
    # resident weights/bias, staging scratch) with 2x headroom.
    bpe = 4
    need = (2 * (H * WC + TH * WC) + 2 * (3 * WC * WC + WC) + (TH + 4) * WC) * bpe
    vmem_limit = int(min(128 * 1024 * 1024, max(4 * 1024 * 1024, 2 * need)))

    out = pl.pallas_call(
        kernel,
        out_shape=jax.ShapeDtypeStruct((N, H, WC), x_lane.dtype),
        grid_spec=pltpu.PrefetchScalarGridSpec(
            num_scalar_prefetch=0,
            grid=(N, NB),
            in_specs=[
                # Whole image block; block index ignores the band axis so it is DMA'd once
                # per batch element and re-used across its bands.
                pl.BlockSpec((1, H, WC), lambda n, b: (n, 0, 0)),
                pl.BlockSpec((3, WC, WC), lambda n, b: (0, 0, 0)),
                pl.BlockSpec((3, WC, WC), lambda n, b: (0, 0, 0)),
                pl.BlockSpec((1, WC), lambda n, b: (0, 0)),
                pl.BlockSpec((1, WC), lambda n, b: (0, 0)),
            ],
            out_specs=pl.BlockSpec((1, TH, WC), lambda n, b: (n, b, 0)),
            scratch_shapes=[pltpu.VMEM((TH + 4, WC), jnp.float32)],
        ),
        compiler_params=pltpu.CompilerParams(
            dimension_semantics=("parallel", "parallel"),
            vmem_limit_bytes=vmem_limit,
        ),
    )(x_lane, m1, m2, b1_lane, b2_lane)
    return out.reshape(N, H, W, Cout)


@jax.jit
def basic_block_forward(x_nchw, params):
    """Forward pass of BasicBlock (stride=1, no downsample). x is NCHW like PyTorch."""
    x = jnp.transpose(x_nchw, (0, 2, 3, 1))                   # NCHW -> NHWC
    out = basic_block_pallas(
        x, params["w1"], params["w2"],
        (params["bn1_gamma"], params["bn1_beta"], params["bn1_mean"], params["bn1_var"]),
        (params["bn2_gamma"], params["bn2_beta"], params["bn2_mean"], params["bn2_var"]))
    return jnp.transpose(out, (0, 3, 1, 2))                    # NHWC -> NCHW


def reference_forward(x_nchw, params):
    """Pure-JAX reference (lax.conv) for correctness checking."""
    def conv3x3(x, w_hwio):
        w_oihw = jnp.transpose(w_hwio, (3, 2, 0, 1))
        return jax.lax.conv_general_dilated(
            x, w_oihw, window_strides=(1, 1), padding=((1, 1), (1, 1)),
            dimension_numbers=("NCHW", "OIHW", "NCHW"))

    def bn(x, g, b, m, v, eps=1e-5):
        g, b, m, v = [a.reshape(1, -1, 1, 1) for a in (g, b, m, v)]
        return (x - m) / jnp.sqrt(v + eps) * g + b

    identity = x_nchw
    out = conv3x3(x_nchw, params["w1"])
    out = bn(out, params["bn1_gamma"], params["bn1_beta"],
             params["bn1_mean"], params["bn1_var"])
    out = jnp.maximum(out, 0.0)
    out = conv3x3(out, params["w2"])
    out = bn(out, params["bn2_gamma"], params["bn2_beta"],
             params["bn2_mean"], params["bn2_var"])
    out = out + identity
    return jnp.maximum(out, 0.0)


if __name__ == "__main__":
    key = jax.random.PRNGKey(0)
    N, C, H, W = 2, 4, 16, 16          # inplanes = planes = 4, stride = 1
    ks = jax.random.split(key, 10)

    x = jax.random.normal(ks[0], (N, C, H, W), dtype=jnp.float32)

    params = {
        "w1": 0.1 * jax.random.normal(ks[1], (3, 3, C, C), dtype=jnp.float32),
        "w2": 0.1 * jax.random.normal(ks[2], (3, 3, C, C), dtype=jnp.float32),
        "bn1_gamma": 1.0 + 0.1 * jax.random.normal(ks[3], (C,), dtype=jnp.float32),
        "bn1_beta": 0.1 * jax.random.normal(ks[4], (C,), dtype=jnp.float32),
        "bn1_mean": 0.1 * jax.random.normal(ks[5], (C,), dtype=jnp.float32),
        "bn1_var": jnp.abs(1.0 + 0.1 * jax.random.normal(ks[6], (C,), dtype=jnp.float32)),
        "bn2_gamma": 1.0 + 0.1 * jax.random.normal(ks[7], (C,), dtype=jnp.float32),
        "bn2_beta": 0.1 * jax.random.normal(ks[8], (C,), dtype=jnp.float32),
        "bn2_mean": 0.1 * jax.random.normal(ks[9], (C,), dtype=jnp.float32),
        "bn2_var": jnp.ones((C,), dtype=jnp.float32),
    }

    out = jax.block_until_ready(basic_block_forward(x, params))
    ref = jax.block_until_ready(reference_forward(x, params))
    np.testing.assert_allclose(np.asarray(out), np.asarray(ref), rtol=1e-4, atol=1e-4)

    print("KERNEL_OK")
</pallas_src>

<mosaic_0001>
module attributes {stable_mosaic.version = 11 : i64} {
  func.func @_basic_block_kernel(%arg0: i32, %arg1: i32, %arg2: memref<1x16x64xf32, #tpu.memory_space<vmem>>, %arg3: memref<3x64x64xf32, #tpu.memory_space<vmem>>, %arg4: memref<3x64x64xf32, #tpu.memory_space<vmem>>, %arg5: memref<1x64xf32, #tpu.memory_space<vmem>>, %arg6: memref<1x64xf32, #tpu.memory_space<vmem>>, %arg7: memref<1x8x64xf32, #tpu.memory_space<vmem>>, %arg8: memref<12x64xf32, #tpu.memory_space<vmem>>) attributes {dimension_semantics = [#tpu.dimension_semantics<parallel>, #tpu.dimension_semantics<parallel>], iteration_bounds = array<i64: 2, 2>, scalar_prefetch = 0 : i64, scratch_operands = 1 : i64, tpu.core_type = #tpu.core_type<tc>, window_params = [{transform_indices = @transform_0, window_bounds = array<i64: 1, 16, 64>}, {pipeline_mode = #tpu.pipeline_mode<synchronous>, transform_indices = @transform_1, window_bounds = array<i64: 3, 64, 64>}, {pipeline_mode = #tpu.pipeline_mode<synchronous>, transform_indices = @transform_2, window_bounds = array<i64: 3, 64, 64>}, {pipeline_mode = #tpu.pipeline_mode<synchronous>, transform_indices = @transform_3, window_bounds = array<i64: 1, 64>}, {pipeline_mode = #tpu.pipeline_mode<synchronous>, transform_indices = @transform_4, window_bounds = array<i64: 1, 64>}, {transform_indices = @transform_5, window_bounds = array<i64: 1, 8, 64>}]} {
    %c8_i32 = arith.constant 8 : i32
    %0 = arith.muli %arg1, %c8_i32 : i32
    %c0 = arith.constant 0 : index
    %1 = arith.index_cast %0 : i32 to index
    %c0_0 = arith.constant 0 : index
    %2 = vector.load %arg2[%c0, %1, %c0_0] : memref<1x16x64xf32, #tpu.memory_space<vmem>>, vector<1x8x64xf32>
    %3 = vector.shape_cast %2 : vector<1x8x64xf32> to vector<8x64xf32>
    %c2 = arith.constant 2 : index
    %c0_1 = arith.constant 0 : index
    %4 = vector.load %arg8[%c2, %c0_1] : memref<12x64xf32, #tpu.memory_space<vmem>>, vector<8x64xf32>
    tpu.vector_store %arg8[%c2, %c0_1], %3 {strides = array<i32>} : memref<12x64xf32, #tpu.memory_space<vmem>>, vector<8x64xf32>,
    %c0_i32 = arith.constant 0 : i32
    %5 = arith.cmpi sgt, %arg1, %c0_i32 : i32
    %6 = arith.extui %5 : i1 to i32
    %c0_i32_2 = arith.constant 0 : i32
    %7 = arith.cmpi ne, %6, %c0_i32_2 : i32
    scf.if %7 {
      %c2_i32 = arith.constant 2 : i32
      %71 = arith.subi %0, %c2_i32 : i32
      %c0_50 = arith.constant 0 : index
      %72 = arith.index_cast %71 : i32 to index
      %c0_51 = arith.constant 0 : index
      %73 = vector.load %arg2[%c0_50, %72, %c0_51] : memref<1x16x64xf32, #tpu.memory_space<vmem>>, vector<1x2x64xf32>
      %74 = vector.shape_cast %73 : vector<1x2x64xf32> to vector<2x64xf32>
      %c0_52 = arith.constant 0 : index
      %c0_53 = arith.constant 0 : index
      %75 = vector.load %arg8[%c0_52, %c0_53] : memref<12x64xf32, #tpu.memory_space<vmem>>, vector<2x64xf32>
      tpu.vector_store %arg8[%c0_52, %c0_53], %74 {strides = array<i32>} : memref<12x64xf32, #tpu.memory_space<vmem>>, vector<2x64xf32>,
    } else {
    }
    %c0_i32_3 = arith.constant 0 : i32
    %8 = arith.cmpi eq, %arg1, %c0_i32_3 : i32
    %9 = arith.extui %8 : i1 to i32
    %c0_i32_4 = arith.constant 0 : i32
    %10 = arith.cmpi ne, %9, %c0_i32_4 : i32
    scf.if %10 {
      %cst_50 = arith.constant 0.000000e+00 : f32
      %71 = vector.broadcast %cst_50 : f32 to vector<2x64xf32>
      %c0_51 = arith.constant 0 : index
      %c0_52 = arith.constant 0 : index
      %72 = vector.load %arg8[%c0_51, %c0_52] : memref<12x64xf32, #tpu.memory_space<vmem>>, vector<2x64xf32>
      tpu.vector_store %arg8[%c0_51, %c0_52], %71 {strides = array<i32>} : memref<12x64xf32, #tpu.memory_space<vmem>>, vector<2x64xf32>,
    } else {
    }
    %c1_i32 = arith.constant 1 : i32
    %11 = arith.cmpi slt, %arg1, %c1_i32 : i32
    %12 = arith.extui %11 : i1 to i32
    %c0_i32_5 = arith.constant 0 : i32
    %13 = arith.cmpi ne, %12, %c0_i32_5 : i32
    scf.if %13 {
      %c8_i32_50 = arith.constant 8 : i32
      %71 = arith.addi %0, %c8_i32_50 : i32
      %c0_51 = arith.constant 0 : index
      %72 = arith.index_cast %71 : i32 to index
      %c0_52 = arith.constant 0 : index
      %73 = vector.load %arg2[%c0_51, %72, %c0_52] : memref<1x16x64xf32, #tpu.memory_space<vmem>>, vector<1x2x64xf32>
      %74 = vector.shape_cast %73 : vector<1x2x64xf32> to vector<2x64xf32>
      %c10 = arith.constant 10 : index
      %c0_53 = arith.constant 0 : index
      %75 = vector.load %arg8[%c10, %c0_53] : memref<12x64xf32, #tpu.memory_space<vmem>>, vector<2x64xf32>
      tpu.vector_store %arg8[%c10, %c0_53], %74 {strides = array<i32>} : memref<12x64xf32, #tpu.memory_space<vmem>>, vector<2x64xf32>,
    } else {
    }
    %c1_i32_6 = arith.constant 1 : i32
    %14 = arith.cmpi eq, %arg1, %c1_i32_6 : i32
    %15 = arith.extui %14 : i1 to i32
    %c0_i32_7 = arith.constant 0 : i32
    %16 = arith.cmpi ne, %15, %c0_i32_7 : i32
    scf.if %16 {
      %cst_50 = arith.constant 0.000000e+00 : f32
      %71 = vector.broadcast %cst_50 : f32 to vector<2x64xf32>
      %c10 = arith.constant 10 : index
      %c0_51 = arith.constant 0 : index
      %72 = vector.load %arg8[%c10, %c0_51] : memref<12x64xf32, #tpu.memory_space<vmem>>, vector<2x64xf32>
      tpu.vector_store %arg8[%c10, %c0_51], %71 {strides = array<i32>} : memref<12x64xf32, #tpu.memory_space<vmem>>, vector<2x64xf32>,
    } else {
    }
    %c0_8 = arith.constant 0 : index
    %c0_9 = arith.constant 0 : index
    %17 = vector.load %arg8[%c0_8, %c0_9] : memref<12x64xf32, #tpu.memory_space<vmem>>, vector<10x64xf32>
    %c0_10 = arith.constant 0 : index
    %c0_11 = arith.constant 0 : index
    %c0_12 = arith.constant 0 : index
    %18 = vector.load %arg3[%c0_10, %c0_11, %c0_12] : memref<3x64x64xf32, #tpu.memory_space<vmem>>, vector<1x64x64xf32>
    %19 = vector.shape_cast %18 : vector<1x64x64xf32> to vector<64x64xf32>
    %cst = arith.constant dense<0.000000e+00> : vector<10x64xf32>
    %20 = tpu.matmul %17, %19, %cst {dimension_numbers = #tpu.dot_dimension_numbers<[1], [0], [0], [1], [0, 0, 1, 1], [], []>} : vector<10x64xf32>, vector<64x64xf32>, vector<10x64xf32> -> vector<10x64xf32>
    %c1 = arith.constant 1 : index
    %c0_13 = arith.constant 0 : index
    %21 = vector.load %arg8[%c1, %c0_13] : memref<12x64xf32, #tpu.memory_space<vmem>>, vector<10x64xf32>
    %c1_14 = arith.constant 1 : index
    %c0_15 = arith.constant 0 : index
    %c0_16 = arith.constant 0 : index
    %22 = vector.load %arg3[%c1_14, %c0_15, %c0_16] : memref<3x64x64xf32, #tpu.memory_space<vmem>>, vector<1x64x64xf32>
    %23 = vector.shape_cast %22 : vector<1x64x64xf32> to vector<64x64xf32>
    %cst_17 = arith.constant dense<0.000000e+00> : vector<10x64xf32>
    %24 = tpu.matmul %21, %23, %cst_17 {dimension_numbers = #tpu.dot_dimension_numbers<[1], [0], [0], [1], [0, 0, 1, 1], [], []>} : vector<10x64xf32>, vector<64x64xf32>, vector<10x64xf32> -> vector<10x64xf32>
    %25 = arith.addf %20, %24 : vector<10x64xf32>
    %c2_18 = arith.constant 2 : index
    %c0_19 = arith.constant 0 : index
    %26 = vector.load %arg8[%c2_18, %c0_19] : memref<12x64xf32, #tpu.memory_space<vmem>>, vector<10x64xf32>
    %c2_20 = arith.constant 2 : index
    %c0_21 = arith.constant 0 : index
    %c0_22 = arith.constant 0 : index
    %27 = vector.load %arg3[%c2_20, %c0_21, %c0_22] : memref<3x64x64xf32, #tpu.memory_space<vmem>>, vector<1x64x64xf32>
    %28 = vector.shape_cast %27 : vector<1x64x64xf32> to vector<64x64xf32>
    %cst_23 = arith.constant dense<0.000000e+00> : vector<10x64xf32>
    %29 = tpu.matmul %26, %28, %cst_23 {dimension_numbers = #tpu.dot_dimension_numbers<[1], [0], [0], [1], [0, 0, 1, 1], [], []>} : vector<10x64xf32>, vector<64x64xf32>, vector<10x64xf32> -> vector<10x64xf32>
    %30 = arith.addf %25, %29 : vector<10x64xf32>
    %c0_24 = arith.constant 0 : index
    %c0_25 = arith.constant 0 : index
    %31 = vector.load %arg5[%c0_24, %c0_25] : memref<1x64xf32, #tpu.memory_space<vmem>>, vector<1x64xf32>
    %32 = vector.broadcast %31 : vector<1x64xf32> to vector<10x64xf32>
    %33 = arith.addf %30, %32 : vector<10x64xf32>
    %cst_26 = arith.constant 0.000000e+00 : f32
    %34 = vector.broadcast %cst_26 : f32 to vector<10x64xf32>
    %35 = arith.maximumf %33, %34 : vector<10x64xf32>
    %c1_i32_27 = arith.constant 1 : i32
    %36 = arith.subi %0, %c1_i32_27 : i32
    %37 = tpu.iota {dimensions = array<i32: 0>} : vector<10x64xi32>
    %38 = vector.broadcast %36 : i32 to vector<10x64xi32>
    %39 = arith.addi %38, %37 : vector<10x64xi32>
    %c0_i32_28 = arith.constant 0 : i32
    %40 = vector.broadcast %c0_i32_28 : i32 to vector<10x64xi32>
    %41 = arith.cmpi sge, %39, %40 : vector<10x64xi32>
    %c16_i32 = arith.constant 16 : i32
    %42 = vector.broadcast %c16_i32 : i32 to vector<10x64xi32>
    %43 = arith.cmpi slt, %39, %42 : vector<10x64xi32>
    %44 = arith.andi %41, %43 : vector<10x64xi1>
    %cst_29 = arith.constant 0.000000e+00 : f32
    %45 = vector.broadcast %cst_29 : f32 to vector<10x64xf32>
    %46 = arith.select %44, %35, %45 : vector<10x64xi1>, vector<10x64xf32>
    %47 = vector.extract_strided_slice %46 {offsets = [0, 0], sizes = [8, 64], strides = [1, 1]} : vector<10x64xf32> to vector<8x64xf32>
    %c0_30 = arith.constant 0 : index
    %c0_31 = arith.constant 0 : index
    %c0_32 = arith.constant 0 : index
    %48 = vector.load %arg4[%c0_30, %c0_31, %c0_32] : memref<3x64x64xf32, #tpu.memory_space<vmem>>, vector<1x64x64xf32>
    %49 = vector.shape_cast %48 : vector<1x64x64xf32> to vector<64x64xf32>
    %cst_33 = arith.constant dense<0.000000e+00> : vector<8x64xf32>
    %50 = tpu.matmul %47, %49, %cst_33 {dimension_numbers = #tpu.dot_dimension_numbers<[1], [0], [0], [1], [0, 0, 1, 1], [], []>} : vector<8x64xf32>, vector<64x64xf32>, vector<8x64xf32> -> vector<8x64xf32>
    %51 = vector.extract_strided_slice %46 {offsets = [1, 0], sizes = [8, 64], strides = [1, 1]} : vector<10x64xf32> to vector<8x64xf32>
    %c1_34 = arith.constant 1 : index
    %c0_35 = arith.constant 0 : index
    %c0_36 = arith.constant 0 : index
    %52 = vector.load %arg4[%c1_34, %c0_35, %c0_36] : memref<3x64x64xf32, #tpu.memory_space<vmem>>, vector<1x64x64xf32>
    %53 = vector.shape_cast %52 : vector<1x64x64xf32> to vector<64x64xf32>
    %cst_37 = arith.constant dense<0.000000e+00> : vector<8x64xf32>
    %54 = tpu.matmul %51, %53, %cst_37 {dimension_numbers = #tpu.dot_dimension_numbers<[1], [0], [0], [1], [0, 0, 1, 1], [], []>} : vector<8x64xf32>, vector<64x64xf32>, vector<8x64xf32> -> vector<8x64xf32>
    %55 = arith.addf %50, %54 : vector<8x64xf32>
    %56 = vector.extract_strided_slice %46 {offsets = [2, 0], sizes = [8, 64], strides = [1, 1]} : vector<10x64xf32> to vector<8x64xf32>
    %c2_38 = arith.constant 2 : index
    %c0_39 = arith.constant 0 : index
    %c0_40 = arith.constant 0 : index
    %57 = vector.load %arg4[%c2_38, %c0_39, %c0_40] : memref<3x64x64xf32, #tpu.memory_space<vmem>>, vector<1x64x64xf32>
    %58 = vector.shape_cast %57 : vector<1x64x64xf32> to vector<64x64xf32>
    %cst_41 = arith.constant dense<0.000000e+00> : vector<8x64xf32>
    %59 = tpu.matmul %56, %58, %cst_41 {dimension_numbers = #tpu.dot_dimension_numbers<[1], [0], [0], [1], [0, 0, 1, 1], [], []>} : vector<8x64xf32>, vector<64x64xf32>, vector<8x64xf32> -> vector<8x64xf32>
    %60 = arith.addf %55, %59 : vector<8x64xf32>
    %c2_42 = arith.constant 2 : index
    %c0_43 = arith.constant 0 : index
    %61 = vector.load %arg8[%c2_42, %c0_43] : memref<12x64xf32, #tpu.memory_space<vmem>>, vector<8x64xf32>
    %c0_44 = arith.constant 0 : index
    %c0_45 = arith.constant 0 : index
    %62 = vector.load %arg6[%c0_44, %c0_45] : memref<1x64xf32, #tpu.memory_space<vmem>>, vector<1x64xf32>
    %63 = vector.broadcast %62 : vector<1x64xf32> to vector<8x64xf32>
    %64 = arith.addf %60, %63 : vector<8x64xf32>
    %65 = arith.addf %64, %61 : vector<8x64xf32>
    %cst_46 = arith.constant 0.000000e+00 : f32
    %66 = vector.broadcast %cst_46 : f32 to vector<8x64xf32>
    %67 = arith.maximumf %65, %66 : vector<8x64xf32>
    %c0_47 = arith.constant 0 : index
    %c0_48 = arith.constant 0 : index
    %c0_49 = arith.constant 0 : index
    %68 = vector.load %arg7[%c0_47, %c0_48, %c0_49] : memref<1x8x64xf32, #tpu.memory_space<vmem>>, vector<1x8x64xf32>
    %69 = vector.shape_cast %68 : vector<1x8x64xf32> to vector<8x64xf32>
    %70 = vector.shape_cast %67 : vector<8x64xf32> to vector<1x8x64xf32>
    tpu.vector_store %arg7[%c0_47, %c0_48, %c0_49], %70 {strides = array<i32>} : memref<1x8x64xf32, #tpu.memory_space<vmem>>, vector<1x8x64xf32>,
    return
  }
  func.func @transform_0(%arg0: i32, %arg1: i32) -> (i32, i32, i32) {
    %c0_i32 = arith.constant 0 : i32
    %c0_i32_0 = arith.constant 0 : i32
    %c0_i32_1 = arith.constant 0 : i32
    return %arg0, %c0_i32, %c0_i32_0 : i32, i32, i32
  }
  func.func @transform_1(%arg0: i32, %arg1: i32) -> (i32, i32, i32) {
    %c0_i32 = arith.constant 0 : i32
    %c0_i32_0 = arith.constant 0 : i32
    %c0_i32_1 = arith.constant 0 : i32
    %c0_i32_2 = arith.constant 0 : i32
    return %c0_i32, %c0_i32_0, %c0_i32_1 : i32, i32, i32
  }
  func.func @transform_2(%arg0: i32, %arg1: i32) -> (i32, i32, i32) {
    %c0_i32 = arith.constant 0 : i32
    %c0_i32_0 = arith.constant 0 : i32
    %c0_i32_1 = arith.constant 0 : i32
    %c0_i32_2 = arith.constant 0 : i32
    return %c0_i32, %c0_i32_0, %c0_i32_1 : i32, i32, i32
  }
  func.func @transform_3(%arg0: i32, %arg1: i32) -> (i32, i32) {
    %c0_i32 = arith.constant 0 : i32
    %c0_i32_0 = arith.constant 0 : i32
    %c0_i32_1 = arith.constant 0 : i32
    return %c0_i32, %c0_i32_0 : i32, i32
  }
  func.func @transform_4(%arg0: i32, %arg1: i32) -> (i32, i32) {
    %c0_i32 = arith.constant 0 : i32
    %c0_i32_0 = arith.constant 0 : i32
    %c0_i32_1 = arith.constant 0 : i32
    return %c0_i32, %c0_i32_0 : i32, i32
  }
  func.func @transform_5(%arg0: i32, %arg1: i32) -> (i32, i32, i32) {
    %c0_i32 = arith.constant 0 : i32
    %c0_i32_0 = arith.constant 0 : i32
    return %arg0, %arg1, %c0_i32 : i32, i32, i32
  }
}

</mosaic_0001>

<bundles_post_ra>
// kernel: tile.13
= control target key start
LH: loop header
LB: loop body
LE: loop exit
PB: predicated region body
PF: predicated region fallthrough
CT: control target
= control target key end

     0   :  { %s28_s0 = inlined_call_operand.vmem [shape: f32[4], index: 0, kind: input, shape index: {}]   ;;  %s29_s1 = inlined_call_operand.vmem [shape: f32[16,4], index: 1, kind: output, shape index: {}]  }
   0x1   :  { %v4_v0 = vld [vmem:[%s28_s0] ss:$0 sm:$0xff] }
   0x2   :  { %5 = vst [vmem:[%s29_s1] sm:$0xff] %v4_v0 }
   0x3   :  { %8 = vst [vmem:[%s29_s1 + $0x8] sm:$0xff] %v4_v0 }

// kernel: tile.14
= control target key start
LH: loop header
LB: loop body
LE: loop exit
PB: predicated region body
PF: predicated region fallthrough
CT: control target
= control target key end

     0   :  { %s131_s10 = smov 60   ;;  %s132_s11 = smov 52   ;;  %vm3_vm0 = vcmask 31744   ;;  %vm9_vm1 = vcmask 523744   ;;  %vm15_vm2 = vcmask 490944   ;;  %vm21_vm3 = vcmask 458144   ;;  %s207_s0 = inlined_call_operand.vmem [shape: f32[16,4], index: 0, kind: input, shape index: {}]   ;;  %s208_s1 = inlined_call_operand.vmem [shape: f32[1,64], index: 1, kind: output, shape index: {}]  }
   0x1   :  { %v101_v0 = vld [vmem:[%s207_s0 + $0xf] sm:$0x1]   ;;  %v103_v1 = vld [vmem:[%s207_s0 + $0xd] sm:$0x1]   ;;  %v105_v2 = vld [vmem:[%s207_s0 + $0xb] sm:$0x1]  }
   0x2   :  { %7 = vrot.lane.b32.xlu0 %v101_v0, %s131_s10  ;;  %19 = vrot.lane.b32.xlu1 %v103_v1, %s132_s11  ;;  %s133_s14 = smov 44   ;;  %v102_v3 = vld [vmem:[%s207_s0 + $0xe] sm:$0x1]   ;;  %v104_v4 = vld [vmem:[%s207_s0 + $0xc] sm:$0x1]   ;;  %s134_s19 = smov 56  }
   0x3   :  { %31 = vrot.lane.b32.xlu2 %v105_v2, %s133_s14  ;;  %s135_s20 = smov 48   ;;  %v106_v5 = vld [vmem:[%s207_s0 + $0xa] sm:$0x1]   ;;  %s136_s23 = smov 40   ;;  %v107_v6 = vld [vmem:[%s207_s0 + $0x9] sm:$0x1]  }
   0x4   :  { %v108_v7 = vld [vmem:[%s207_s0 + $0x8] sm:$0x1]   ;;  %s137_s28 = smov 36   ;;  %s138_s29 = smov 32   ;;  %v109_v8 = vld [vmem:[%s207_s0 + $0x7] sm:$0x1]  }
   0x5   :  { %s139_s3 = smov 28   ;;  %v110_v9 = vld [vmem:[%s207_s0 + $0x6] sm:$0x1]   ;;  %v111_v10 = vld [vmem:[%s207_s0 + $0x5] sm:$0x1]   ;;  %s140_s8 = smov 24  }
   0x6   :  { %s141_s9 = smov 20   ;;  %v112_v11 = vld [vmem:[%s207_s0 + $0x4] sm:$0x1]   ;;  %s142_s12 = smov 16   ;;  %v113_v12 = vld [vmem:[%s207_s0 + $0x3] sm:$0x1]  }
   0x7   :  { %v114_v13 = vld [vmem:[%s207_s0 + $0x2] sm:$0x1]   ;;  %s143_s17 = smov 12   ;;  %s144_s18 = smov 8   ;;  %v115_v14 = vld [vmem:[%s207_s0 + $0x1] sm:$0x1]  }
   0x8   :  { %s145_s21 = smov 4   ;;  %v2_v15 = vld [vmem:[%s207_s0] sm:$0x1]   ;;  %vm27_vm4 = vcmask 425344   ;;  %vm33_vm5 = vcmask 392544   ;;  %vm39_vm6 = vcmask 359744  }
   0x9   :  { %4 = vst.msk [vmem:[#allocation0] sm:$0x1] %vm3_vm0, %v2_v15   ;;  %vm45_vm7 = vcmask 326944   ;;  %vm51_vm8 = vcmask 294144   ;;  %vm57_vm9 = vcmask 261344   ;;  %vm63_vm10 = vcmask 228544  }
   0xa   :  { %13 = vrot.lane.b32.xlu0 %v102_v3, %s134_s19  ;;  %25 = vrot.lane.b32.xlu1 %v104_v4, %s135_s20  ;;  %vm69_vm11 = vcmask 195744   ;;  %vm75_vm12 = vcmask 162944   ;;  %vm81_vm13 = vcmask 130144   ;;  %vm87_vm14 = vcmask 97344  }
   0xb   :  { %37 = vrot.lane.b32.xlu2 %v106_v5, %s136_s23  ;;  %vm93_vm15 = vcmask 64544  }
  0x12   :  { %43 = vrot.lane.b32.xlu0 %v107_v6, %s137_s28  ;;  %49 = vrot.lane.b32.xlu1 %v108_v7, %s138_s29 }
  0x13   :  { %55 = vrot.lane.b32.xlu2 %v109_v8, %s139_s3 }
  0x1a   :  { %61 = vrot.lane.b32.xlu0 %v110_v9, %s140_s8  ;;  %67 = vrot.lane.b32.xlu1 %v111_v10, %s141_s9 }
  0x1b   :  { %73 = vrot.lane.b32.xlu2 %v112_v11, %s142_s12 }
  0x22   :  { %79 = vrot.lane.b32.xlu0 %v113_v12, %s143_s17  ;;  %85 = vrot.lane.b32.xlu1 %v114_v13, %s144_s18 }
  0x23   :  { %91 = vrot.lane.b32.xlu2 %v115_v14, %s145_s21 }
  0x5d   :  { %v32_v16 = vpop.permute.xlu2 %31  }
  0x65   :  { %v38_v17 = vpop.permute.xlu2 %37  }
  0x6d   :  { %v56_v18 = vpop.permute.xlu2 %55  }
  0x74   :  { %v8_v19 = vpop.permute.xlu0 %7   ;;  %v20_v20 = vpop.permute.xlu1 %19  }
  0x75   :  { %10 = vst.msk [vmem:[#allocation0] sm:$0x1] %vm9_vm1, %v8_v19   ;;  %v74_v21 = vpop.permute.xlu2 %73  }
  0x7c   :  { %v14_v22 = vpop.permute.xlu0 %13   ;;  %v26_v23 = vpop.permute.xlu1 %25  }
  0x7d   :  { %16 = vst.msk [vmem:[#allocation0] sm:$0x1] %vm15_vm2, %v14_v22   ;;  %v92_v24 = vpop.permute.xlu2 %91  }
  0x7e   :  { %22 = vst.msk [vmem:[#allocation0] sm:$0x1] %vm21_vm3, %v20_v20  }
  0x7f   :  { %28 = vst.msk [vmem:[#allocation0] sm:$0x1] %vm27_vm4, %v26_v23  }
  0x80   :  { %34 = vst.msk [vmem:[#allocation0] sm:$0x1] %vm33_vm5, %v32_v16  }
  0x81   :  { %40 = vst.msk [vmem:[#allocation0] sm:$0x1] %vm39_vm6, %v38_v17  }
  0x84   :  { %v44_v25 = vpop.permute.xlu0 %43   ;;  %v50_v26 = vpop.permute.xlu1 %49  }
  0x85   :  { %46 = vst.msk [vmem:[#allocation0] sm:$0x1] %vm45_vm7, %v44_v25  }
  0x86   :  { %52 = vst.msk [vmem:[#allocation0] sm:$0x1] %vm51_vm8, %v50_v26  }
  0x87   :  { %58 = vst.msk [vmem:[#allocation0] sm:$0x1] %vm57_vm9, %v56_v18  }
  0x8c   :  { %v62_v27 = vpop.permute.xlu0 %61   ;;  %v68_v28 = vpop.permute.xlu1 %67  }
  0x8d   :  { %64 = vst.msk [vmem:[#allocation0] sm:$0x1] %vm63_vm10, %v62_v27  }
  0x8e   :  { %70 = vst.msk [vmem:[#allocation0] sm:$0x1] %vm69_vm11, %v68_v28  }
  0x8f   :  { %76 = vst.msk [vmem:[#allocation0] sm:$0x1] %vm75_vm12, %v74_v21  }
  0x94   :  { %v80_v29 = vpop.permute.xlu0 %79   ;;  %v86_v30 = vpop.permute.xlu1 %85  }
  0x95   :  { %82 = vst.msk [vmem:[#allocation0] sm:$0x1] %vm81_vm13, %v80_v29  }
  0x96   :  { %88 = vst.msk [vmem:[#allocation0] sm:$0x1] %vm87_vm14, %v86_v30  }
  0x97   :  { %94 = vst.msk [vmem:[#allocation0] sm:$0x1] %vm93_vm15, %v92_v24  }
  0x9e   :  { %v97_v31 = vld [vmem:[#allocation0] sm:$0x1] }
  0x9f   :  { %100 = vst [vmem:[%s208_s1] sm:$0x1] %v97_v31 }

// kernel: basic_block_forward.1
= control target key start
LH: loop header
LB: loop body
LE: loop exit
PB: predicated region body
PF: predicated region fallthrough
CT: control target
= control target key end

     0   :  { %s800_s18 = smov 0   ;;  %s802_s19 = smov 0   ;;  %s1033_s0 = inlined_call_operand.vmem [shape: f32[2,16,64], index: 0, kind: input, shape index: {}]   ;;  %s1034_s1 = inlined_call_operand.vmem [shape: f32[3,64,64], index: 1, kind: input, shape index: {}]   ;;  %s1035_s2 = inlined_call_operand.vmem [shape: f32[3,64,64], index: 2, kind: input, shape index: {}]   ;;  %s1036_s3 = inlined_call_operand.vmem [shape: f32[1,64], index: 3, kind: input, shape index: {}]   ;;  %s1037_s4 = inlined_call_operand.vmem [shape: f32[1,64], index: 4, kind: input, shape index: {}]   ;;  %s1038_s5 = inlined_call_operand.vmem [shape: f32[2,16,64], index: 5, kind: output, shape index: {}]  }
   0x1   :  { %s804_s20 = smov 0   ;;  %s806_s21 = smov 0  }
   0x2   :  { %s808_s22 = smov 0  }
   0x3 LB: > { %s24_s23 = sadd.s32 1, %s758_s20  ;;  %s27_s24 = sadd.s32 1, %s762_s21  ;;  %s766_s22 = sphi %s808_s22, %s15_s22   ;;  %s762_s21 = sphi %s806_s21, %s1042_s21   ;;  %s758_s20 = sphi %s804_s20, %s1041_s20   ;;  %s754_s19 = sphi %s802_s19, %s1040_s19   ;;  %s750_s18 = sphi %s800_s18, %s1039_s18  }
   0x4   : > { %p25_p0 = scmp.ge.s32.totalorder %s24_s23, 2  ;;  %p626_p1 = scmp.ge.s32.totalorder %s766_s22, 1 }
   0x5   : > { %p201_p2 = scmp.lt.s32.totalorder %s766_s22, 5 }
   0x6   : > { %s1044_s23 = smov (%p25_p0, %s24_s23), 0  ;;  %s1046_s24 = smov (!%p25_p0, %s27_s24), %s762_s21 }
   0x7   : > { %p202_p3 = pnand %p626_p1, %p201_p2  ;;  %p29_p4 = scmp.ge.s32.totalorder %s1046_s24, 2 }
   0x8   : > { %p232_p5 = scmp.lt.s32.totalorder (!%p202_p3), %s754_s19, 1  ;;  %p239_p6 = scmp.lt.s32.totalorder (!%p202_p3), %s750_s18, 1 }
   0x9   : > { %s1048_s24 = smov (%p29_p4, %s1046_s24), 0  ;;  %205 = sbr.rel (%p202_p3) target bundleno = 362 (0x16a), region = 40 }
   0xa   : > { %s834_s25 = sshll.u32 (!%p202_p3), %s750_s18, 3  ;;  %p632_p7 = scmp.le.s32.totalorder (!%p202_p3), %s750_s18, 0 }
   0xe   : > { %s1050_s19 = smov (!%p232_p5, %s754_s19), 1  ;;  %vm248_vm0 = vcmask 523264   ;;  %s633_s13 = sadd.s32 (!%p632_p7), 4294967294, %s834_s25 }
   0xf   : > { %s240_s26 = scalar_select %p239_p6, %s750_s18, 1 }
  0x10   : > { %s683_s27 = sshll.u32 %s1050_s19, 4  ;;  %s629_s28 = sshll.u32 %s1050_s19, 1 }
  0x11   : > { %s236_s6 = scalar_lea.vmem %s1033_s0, %s683_s27  ;;  %s242_s7 = sadd.s32 %s629_s28, %s240_s26 }
  0x12   : > { %s630_s8 = sshll.u32 %s242_s7, 3  ;;  %s246_s9 = scalar_lea.vmem %s236_s6, %s834_s25 }
  0x13   : > { %s844_s12 = scalar_lea.vmem %s1038_s5, %s630_s8  ;;  %v247_v0 = vld [vmem:[%s246_s9] sm:$0xff]  ;;  %253 = sbr.rel (%p632_p7) target bundleno = 26 (0x1a), region = 44 }
  0x14   : > { %249 = vst.msk [vmem:[#allocation2 + $0x2] sm:$0xff] %vm248_vm0, %v247_v0  ;;  %s255_s14 = scalar_lea.vmem (!%p632_p7), %s236_s6, %s633_s13 }
  0x18   : > { %vm257_vm1 = vcmask 517120   ;;  %v256_v1 = vld [vmem:[%s255_s14] sm:$0x3] }
  0x19   : > { %258 = vst.msk [vmem:[#allocation2] sm:$0x3] %vm257_vm1, %v256_v1 }
  0x1a PF: > { %p634_p8 = scmp.ne.s32.totalorder %s750_s18, 0 }
  0x1c   : > { %262 = sbr.rel (%p634_p8) target bundleno = 35 (0x23), region = 48 }
  0x21   : > { %vm263_vm2 = vcmask 517120   ;;  %v768_v2 = vmov 0.0  }
  0x22   : > { %264 = vst.msk [vmem:[#allocation2] sm:$0x3] %vm263_vm2, %v768_v2 }
  0x23 PF: > { %p635_p9 = scmp.ge.s32.totalorder %s750_s18, 1 }
  0x25   : > { %268 = sbr.rel (%p635_p9) target bundleno = 44 (0x2c), region = 52 }
  0x2a   : > { %v637_v3 = vld [vmem:[%s246_s9 + $0x8] sm:$0x3]  ;;  %vm272_vm3 = vcmask 517120  }
  0x2b   : > { %273 = vst.msk [vmem:[#allocation2 + $0xa] sm:$0x3] %vm272_vm3, %v637_v3 }
  0x2c PF: > { %p638_p10 = scmp.ne.s32.totalorder %s750_s18, 1 }
  0x2e   : > { %277 = sbr.rel (%p638_p10) target bundleno = 53 (0x35), region = 56 }
  0x33   : > { %vm278_vm4 = vcmask 517120   ;;  %v769_v4 = vmov 0.0  }
  0x34   : > { %279 = vst.msk [vmem:[#allocation2 + $0xa] sm:$0x3] %vm278_vm4, %v769_v4 }
  0x35 PF: > { %v658_v5 = vld [vmem:[%s1034_s1 + $0xb8] sm:$0xff]  ;;  %v657_v6 = vld [vmem:[%s1034_s1 + $0xb0] sm:$0xff]  ;;  %v656_v10 = vld [vmem:[%s1034_s1 + $0xa8] sm:$0xff]  ;;  %v410_v59 = vlaneseq  ;;  %s661_s18 = sadd.s32 4294967295, %s834_s25  ;;  %vm443_vm11 = vcmask 1046528   ;;  %vm500_vm12 = vcmask 1045504  }
  0x36   : > { %v646_v7 = vld [vmem:[%s1034_s1 + $0x78] sm:$0xff]  ;;  %384 = vmatpush.msra.mxu2 %v658_v5  ;;  %v645_v9 = vld [vmem:[%s1034_s1 + $0x70] sm:$0xff]  ;;  %v644_v12 = vld [vmem:[%s1034_s1 + $0x68] sm:$0xff]  ;;  %v413_v61 = vstv %s661_s18 }
  0x37   : > { %315 = vmatpush.msra.mxu0 %v646_v7  ;;  %v289_v8 = vld [vmem:[%s1034_s1 + $0x38] sm:$0xff]  ;;  %v288_v11 = vld [vmem:[%s1034_s1 + $0x30] sm:$0xff]  ;;  %v287_v13 = vld [vmem:[%s1034_s1 + $0x28] sm:$0xff]  ;;  %v411_v60 = vshrl.u32 %v410_v59, 7 }
  0x38   : > { %344 = vmatpush.msra.mxu1 %v289_v8  ;;  %385 = vmatpush.msra.mxu2 %v657_v6  ;;  %v655_v14 = vld [vmem:[%s1034_s1 + $0xa0] sm:$0xff]  ;;  %v654_v17 = vld [vmem:[%s1034_s1 + $0x98] sm:$0xff]  ;;  %v653_v20 = vld [vmem:[%s1034_s1 + $0x90] sm:$0xff] }
  0x39   : > { %316 = vmatpush.msra.mxu0 %v645_v9  ;;  %v643_v15 = vld [vmem:[%s1034_s1 + $0x60] sm:$0xff]  ;;  %v642_v18 = vld [vmem:[%s1034_s1 + $0x58] sm:$0xff]  ;;  %v641_v21 = vld [vmem:[%s1034_s1 + $0x50] sm:$0xff]  ;;  %v414_v1 = vadd.s32 %v413_v61, %v411_v60  ;;  %v412_v5 = vadd.s32 8, %v411_v60 }
  0x3a   : > { %345 = vmatpush.msra.mxu1 %v288_v11  ;;  %386 = vmatpush.msra.mxu2 %v656_v10  ;;  %v286_v16 = vld [vmem:[%s1034_s1 + $0x20] sm:$0xff]  ;;  %v285_v19 = vld [vmem:[%s1034_s1 + $0x18] sm:$0xff]  ;;  %v284_v22 = vld [vmem:[%s1034_s1 + $0x10] sm:$0xff] }
  0x3b   : > { %317 = vmatpush.msra.mxu0 %v644_v12  ;;  %v652_v23 = vld [vmem:[%s1034_s1 + $0x88] sm:$0xff]  ;;  %v651_v26 = vld [vmem:[%s1034_s1 + $0x80] sm:$0xff]  ;;  %v431_v32 = vld [vmem:[%s1035_s2 + $0x38] sm:$0xff]  ;;  %vm416_vm5 = vcmp.ge.s32.totalorder %v414_v1, 0  ;;  %vm418_vm6 = vcmp.lt.s32.totalorder %v414_v1, 16  ;;  %v415_v11 = vadd.s32 %v413_v61, %v412_v5 }
  0x3c   : > { %346 = vmatpush.msra.mxu1 %v287_v13  ;;  %387 = vmatpush.msra.mxu2 %v655_v14  ;;  %v640_v24 = vld [vmem:[%s1034_s1 + $0x48] sm:$0xff]  ;;  %v639_v27 = vld [vmem:[%s1034_s1 + $0x40] sm:$0xff]  ;;  %v430_v33 = vld [vmem:[%s1035_s2 + $0x30] sm:$0xff] }
  0x3d   : > { %318 = vmatpush.msra.mxu0 %v643_v15  ;;  %v283_v25 = vld [vmem:[%s1034_s1 + $0x8] sm:$0xff]  ;;  %v282_v29 = vld [vmem:[%s1034_s1] sm:$0xff]  ;;  %v427_v39 = vld [vmem:[%s1035_s2 + $0x18] sm:$0xff]  ;;  %vm417_vm8 = vcmp.ge.s32.totalorder %v415_v11, 0  ;;  %vm419_vm9 = vcmp.lt.s32.totalorder %v415_v11, 16 }
  0x3e   : > { %347 = vmatpush.msra.mxu1 %v286_v16  ;;  %388 = vmatpush.msra.mxu2 %v654_v17  ;;  %v921_v28 = vld [vmem:[#allocation2 + $0x2] sm:$0xff]  ;;  %v360_v35 = vld [vmem:[#allocation2 + $0xa] sm:$0x3]  ;;  %v426_v40 = vld [vmem:[%s1035_s2 + $0x10] sm:$0xff] }
  0x3f   : > { %319 = vmatpush.msra.mxu0 %v642_v18  ;;  %v290_v30 = vld [vmem:[#allocation2 + $0x1] sm:$0xff]  ;;  %v291_v36 = vld [vmem:[#allocation2 + $0x9] sm:$0x3]  ;;  %v669_v41 = vld [vmem:[%s1035_s2 + $0x78] sm:$0xff] }
  0x40   : > { %348 = vmatpush.msra.mxu1 %v285_v19  ;;  %389 = vmatpush.msra.mxu2 %v653_v20  ;;  %v280_v31 = vld [vmem:[#allocation2] sm:$0xff]  ;;  %v429_v34 = vld [vmem:[%s1035_s2 + $0x28] sm:$0xff]  ;;  %v679_v42 = vld [vmem:[%s1035_s2 + $0xb8] sm:$0xff] }
  0x41   : > { %320 = vmatpush.msra.mxu0 %v641_v21  ;;  %v281_v37 = vld [vmem:[#allocation2 + $0x8] sm:$0x3]  ;;  %v428_v38 = vld [vmem:[%s1035_s2 + $0x20] sm:$0xff]  ;;  %457 = vmatpush.msra.mxu3 %v669_v41  ;;  %v668_v44 = vld [vmem:[%s1035_s2 + $0x70] sm:$0xff] }
  0x42   : > { %349 = vmatpush.msra.mxu1 %v284_v22  ;;  %390 = vmatpush.msra.mxu2 %v652_v23  ;;  %v425_v43 = vld [vmem:[%s1035_s2 + $0x8] sm:$0xff]  ;;  %v678_v45 = vld [vmem:[%s1035_s2 + $0xb0] sm:$0xff]  ;;  %v424_v46 = vld [vmem:[%s1035_s2] sm:$0xff] }
  0x43   : > { %321 = vmatpush.msra.mxu0 %v640_v24  ;;  %458 = vmatpush.msra.mxu3 %v668_v44  ;;  %v667_v47 = vld [vmem:[%s1035_s2 + $0x68] sm:$0xff]  ;;  %v666_v49 = vld [vmem:[%s1035_s2 + $0x60] sm:$0xff]  ;;  %v665_v51 = vld [vmem:[%s1035_s2 + $0x58] sm:$0xff] }
  0x44   : > { %350 = vmatpush.msra.mxu1 %v283_v25  ;;  %391 = vmatpush.msra.mxu2 %v651_v26  ;;  %v677_v48 = vld [vmem:[%s1035_s2 + $0xa8] sm:$0xff]  ;;  %v676_v50 = vld [vmem:[%s1035_s2 + $0xa0] sm:$0xff]  ;;  %v675_v52 = vld [vmem:[%s1035_s2 + $0x98] sm:$0xff] }
  0x45   : > { %322 = vmatpush.msra.mxu0 %v639_v27  ;;  %659 = vmatmul.msk.f32.vlgmr.msra.gmra.mxu2 %vm248_vm0, %v921_v28  ;;  %v664_v53 = vld [vmem:[%s1035_s2 + $0x50] sm:$0xff]  ;;  %v663_v55 = vld [vmem:[%s1035_s2 + $0x48] sm:$0xff]  ;;  %v662_v57 = vld [vmem:[%s1035_s2 + $0x40] sm:$0xff] }
  0x46   : > { %351 = vmatpush.msra.mxu1 %v282_v29  ;;  %647 = vmatmul.msk.f32.vlgmr.msra.gmra.mxu0 %vm248_vm0, %v290_v30  ;;  %v674_v54 = vld [vmem:[%s1035_s2 + $0x90] sm:$0xff]  ;;  %v673_v56 = vld [vmem:[%s1035_s2 + $0x88] sm:$0xff]  ;;  %v672_v58 = vld [vmem:[%s1035_s2 + $0x80] sm:$0xff] }
  0x47   : > { %649 = vmatmul.msk.f32.vlgmr.msra.gmra.mxu1 %vm248_vm0, %v280_v31  ;;  %479 = vmatpush.msrb.mxu0 %v431_v32  ;;  %v726_v2 = vld [vmem:[%s1036_s3] ss:$0 sm:$0xff]  ;;  %vm420_vm7 = vmand %vm416_vm5, %vm418_vm6 }
  0x48   : > { %514 = vmatpush.msrb.mxu1 %v679_v42  ;;  %459 = vmatpush.msra.mxu3 %v667_v47  ;;  %vm421_vm10 = vmand %vm417_vm8, %vm419_vm9  ;;  %v727_v27 = vld [vmem:[%s1037_s4] ss:$0 sm:$0xff] }
  0x49   : > { %480 = vmatpush.msrb.mxu0 %v430_v33 }
  0x4a   : > { %515 = vmatpush.msrb.mxu1 %v678_v45  ;;  %460 = vmatpush.msra.mxu3 %v666_v49 }
  0x4b   : > { %481 = vmatpush.msrb.mxu0 %v429_v34 }
  0x4c   : > { %516 = vmatpush.msrb.mxu1 %v677_v48  ;;  %461 = vmatpush.msra.mxu3 %v665_v51 }
  0x4d   : > { %660 = vmatmul.msk.f32.gmra.mxu2 %vm248_vm0, %v360_v35  ;;  %482 = vmatpush.msrb.mxu0 %v428_v38 }
  0x4e   : > { %648 = vmatmul.msk.f32.gmra.mxu0 %vm248_vm0, %v291_v36  ;;  %517 = vmatpush.msrb.mxu1 %v676_v50 }
  0x4f   : > { %650 = vmatmul.msk.f32.gmra.mxu1 %vm248_vm0, %v281_v37  ;;  %483 = vmatpush.msrb.mxu0 %v427_v39 }
  0x50   : > { %518 = vmatpush.msrb.mxu1 %v675_v52  ;;  %462 = vmatpush.msra.mxu3 %v664_v53 }
  0x51   : > { %484 = vmatpush.msrb.mxu0 %v426_v40 }
  0x52   : > { %519 = vmatpush.msrb.mxu1 %v674_v54  ;;  %463 = vmatpush.msra.mxu3 %v663_v55 }
  0x53   : > { %485 = vmatpush.msrb.mxu0 %v425_v43 }
  0x54   : > { %520 = vmatpush.msrb.mxu1 %v673_v56  ;;  %464 = vmatpush.msra.mxu3 %v662_v57 }
  0x55   : > { %486 = vmatpush.msrb.mxu0 %v424_v46 }
  0x56   : > { %521 = vmatpush.msrb.mxu1 %v672_v58 }
  0xc3   : > { %v324_v62 = vpop.f32.mrf.mxu0 }
  0xc4   : > { %v353_v63 = vpop.f32.mrf.mxu1 }
  0xc5   : > { %v354_v0 = vadd.f32 %v353_v63, %v324_v62 }
  0xc8   : > { %v393_v3 = vpop.f32.mrf.mxu2 }
  0xc9   : > { %v399_v4 = vadd.f32 %v393_v3, %v354_v0 }
  0xcb   : > { %v405_v6 = vadd.f32 %v726_v2, %v399_v4  ;;  %v327_v7 = vpop.f32.mrf.mxu0 }
  0xcc   : > { %v356_v8 = vpop.f32.mrf.mxu1 }
  0xcd   : > { %v407_v9 = vmax.f32 %v405_v6, 0.0  ;;  %v357_v10 = vadd.f32 %v356_v8, %v327_v7 }
  0xcf   : > { %v422_v12 = vsel %vm420_vm7, %v407_v9, 0.0 }
  0xd0   : > { %v396_v13 = vpop.f32.mrf.mxu2  ;;  %671 = vmatmul.msk.f32.vlgmr.msrb.gmra.mxu0 %vm248_vm0, %v422_v12  ;;  %v444_v19 = vrot.slane %v422_v12, 1  ;;  %v501_v20 = vrot.slane %v422_v12, 2 }
  0xd1   : > { %v400_v14 = vadd.f32 %v396_v13, %v357_v10 }
  0xd3   : > { %v406_v15 = vadd.f32 %v726_v2, %v400_v14 }
  0xd5   : > { %v408_v16 = vmax.f32 %v406_v15, 0.0 }
  0xd7   : > { %v423_v17 = vsel %vm421_vm10, %v408_v16, 0.0 }
  0xd8   : > { %v502_v18 = vrot.slane %v423_v17, 2  ;;  %v445_v21 = vrot.slane %v423_v17, 1 }
  0xda   : > { %v446_v22 = vsel %vm443_vm11, %v444_v19, %v445_v21  ;;  %v503_v23 = vsel %vm500_vm12, %v501_v20, %v502_v18 }
  0xdb   : > { %670 = vmatmul.msk.f32.vlgmr.msra.gmra.mxu3 %vm248_vm0, %v446_v22  ;;  %680 = vmatmul.msk.f32.vlgmr.msrb.gmra.mxu1 %vm248_vm0, %v503_v23 }
 0x14d   : > { %v488_v24 = vpop.f32.mrf.mxu0 }
 0x158   : > { %v523_v29 = vpop.f32.mrf.mxu1 }
 0x15e   : > { %v466_v25 = vpop.f32.mrf.mxu3 }
 0x15f   : > { %v489_v26 = vadd.f32 %v488_v24, %v466_v25 }
 0x161   : > { %v526_v30 = vadd.f32 %v523_v29, %v489_v26 }
 0x163   : > { %v532_v31 = vadd.f32 %v727_v27, %v526_v30 }
 0x165   : > { %v533_v32 = vadd.f32 %v532_v31, %v921_v28 }
 0x167   : > { %v534_v33 = vmax.f32 %v533_v32, 0.0 }
 0x169   : > { %535 = vst.msk [vmem:[%s844_s12] sm:$0xff] %vm248_vm0, %v534_v33 }
 0x16a PF: > { %s15_s22 = sadd.s32 1, %s766_s22   ;;  %s1039_s18 = smov %s758_s20 }
 0x16b   : > { %p12_p11 = scmp.ge.s32.totalorder %s15_s22, 6   ;;  %s1040_s19 = smov %s762_s21 }
 0x16c   : > { %s1041_s20 = smov %s1044_s23  ;;  %s1042_s21 = smov %s1048_s24 }
 0x16d   :  { %14 = sbr.rel (!%p12_p11) target bundleno = 3 (0x3), region = 93 }

</bundles_post_ra>
